<compile_context>
chip_gen: v6e
topology: v6e:2x2x1
jax: 0.10.0
libtpu: 0.0.40
codegen_flags: <defaults>
</compile_context>

<pallas_src>
import jax
import jax.numpy as jnp
import numpy as np
from jax.experimental import pallas as pl
from jax.experimental.pallas import tpu as pltpu


# ---------------------------------------------------------------------------
# Streaming attention matmul: o = W @ X_tile.
#   w_ref: (D1, C)   x_ref: (C, tile)   o_ref: (D1, tile)
# ---------------------------------------------------------------------------
def attn_matmul_kernel(w_ref, x_ref, o_ref):
    o_ref[...] = jnp.dot(
        w_ref[...], x_ref[...], preferred_element_type=jnp.float32
    ).astype(o_ref.dtype)


_LANE = 128
_TILE_QUANTUM = 512                    # multiple of 128-lane vregs & 256-wide MXU N
_STEP_BYTES_BUDGET = 6 << 20           # X-tile + out-tile bytes per grid step (x2 buffers)
_NATIVE_MIN_XTILE_BYTES = 256 * 1024   # below this, native per-batch tiles are overhead-bound
_VMEM_LIMIT = 32 << 20                 # safe on v5e/v6e (128 MiB) and v7x (64 MiB)


def _pick_tile(rows_in, rows_out, dim):
    """Pick a lane-tile size along `dim` so one step moves ~_STEP_BYTES_BUDGET bytes.

    Returns (tile, padded_dim) with tile a multiple of 128 (or == dim when dim
    is small / already aligned) and tile dividing padded_dim exactly.
    """
    per_lane_bytes = 4 * (rows_in + rows_out)
    cap = max(_TILE_QUANTUM,
              (_STEP_BYTES_BUDGET // per_lane_bytes) // _TILE_QUANTUM * _TILE_QUANTUM)
    if dim <= cap:
        if dim <= _LANE or dim % _LANE == 0:
            return dim, dim                      # full-extent block, no padding
        pad = ((dim + _LANE - 1) // _LANE) * _LANE
        return pad, pad
    n_tiles = -(-dim // cap)                     # cdiv
    tile = -(-dim // n_tiles)                    # balanced tiles, minimal padding
    tile = ((tile + _TILE_QUANTUM - 1) // _TILE_QUANTUM) * _TILE_QUANTUM
    return tile, tile * n_tiles


@jax.jit
def spatial_attention(X, z_re, z_im, loc):
    """X: (B, C, T) f32; z_re/z_im: (D1, K, K); loc: (C, 2) in [0,1].

    Returns (B, D1, T) f32, matching the PyTorch module's output layout.
    """
    B, C, T = X.shape
    D1, K, _ = z_re.shape
    KK = K * K

    # --- Batch-invariant attention weights (tiny, parameter-only): plain XLA. ---
    k_idx = jnp.arange(K, dtype=jnp.float32)
    kx = k_idx[:, None, None] * loc[None, None, :, 0]        # (K, 1, C)
    ly = k_idx[None, :, None] * loc[None, None, :, 1]        # (1, K, C)
    phase = 2.0 * jnp.pi * (kx + ly)                         # (K, K, C)
    cos_b = jnp.cos(phase).reshape(KK, C)
    sin_b = jnp.sin(phase).reshape(KK, C)
    A = (z_re.reshape(D1, KK).astype(jnp.float32) @ cos_b
         + z_im.reshape(D1, KK).astype(jnp.float32) @ sin_b)  # (D1, C)
    A = A - jnp.max(A, axis=1, keepdims=True)                 # stable softmax
    E = jnp.exp(A)
    W = E / jnp.sum(E, axis=1, keepdims=True)                 # (D1, C) f32

    X = X.astype(jnp.float32)
    use_native = (4 * C * T) >= _NATIVE_MIN_XTILE_BYTES

    if use_native:
        # ------------- Native-layout path: read X as (B,C,T), write (B,D1,T). ---
        tT, T_pad = _pick_tile(C, D1, T)
        X_in = X if T_pad == T else jnp.pad(X, ((0, 0), (0, 0), (0, T_pad - T)))
        n_t = T_pad // tT

        grid_spec = pltpu.PrefetchScalarGridSpec(
            num_scalar_prefetch=0,
            grid=(B, n_t),
            in_specs=[
                pl.BlockSpec((D1, C), lambda b, i: (0, 0)),          # W, resident
                pl.BlockSpec((None, C, tT), lambda b, i: (b, 0, i)),  # X tile (squeezed batch)
            ],
            out_specs=pl.BlockSpec((None, D1, tT), lambda b, i: (b, 0, i)),
        )
        out = pl.pallas_call(
            attn_matmul_kernel,
            out_shape=jax.ShapeDtypeStruct((B, D1, T_pad), jnp.float32),
            grid_spec=grid_spec,
            compiler_params=pltpu.CompilerParams(
                dimension_semantics=("parallel", "parallel"),
                vmem_limit_bytes=_VMEM_LIMIT),
        )(W, X_in)
        if T_pad != T:
            out = out[:, :, :T]
        return out

    # ----------------- Small-T fallback: fold batch into the lane axis. ---------
    N = B * T
    X2 = jnp.transpose(X, (1, 0, 2)).reshape(C, N)            # (C, B*T)
    tN, N_pad = _pick_tile(C, D1, N)
    if N_pad != N:
        X2 = jnp.pad(X2, ((0, 0), (0, N_pad - N)))
    n_tiles = N_pad // tN

    grid_spec = pltpu.PrefetchScalarGridSpec(
        num_scalar_prefetch=0,
        grid=(n_tiles,),
        in_specs=[
            pl.BlockSpec((D1, C), lambda i: (0, 0)),           # W, resident
            pl.BlockSpec((C, tN), lambda i: (0, i)),           # streamed X tile
        ],
        out_specs=pl.BlockSpec((D1, tN), lambda i: (0, i)),
    )
    out2 = pl.pallas_call(
        attn_matmul_kernel,
        out_shape=jax.ShapeDtypeStruct((D1, N_pad), jnp.float32),
        grid_spec=grid_spec,
        compiler_params=pltpu.CompilerParams(
            dimension_semantics=("parallel",),
            vmem_limit_bytes=_VMEM_LIMIT),
    )(W, X2)
    out = out2[:, :N].reshape(D1, B, T)
    return jnp.transpose(out, (1, 0, 2))


def reference(X, z_re, z_im, loc):
    D1, K, _ = z_re.shape
    x_c, y_c = loc[:, 0], loc[:, 1]
    outs = []
    for j in range(D1):
        a_j = jnp.zeros_like(x_c)
        for k in range(K):
            for l in range(K):
                ph = 2 * jnp.pi * (k * x_c + l * y_c)
                a_j = a_j + z_re[j, k, l] * jnp.cos(ph) + z_im[j, k, l] * jnp.sin(ph)
        e = jnp.exp(a_j)
        outs.append(jnp.einsum('c,bct->bt', e, X) / e.sum())
    return jnp.transpose(jnp.stack(outs), (1, 0, 2))


if __name__ == "__main__":
    key = jax.random.PRNGKey(0)
    k1, k2, k3, k4, k5 = jax.random.split(key, 5)

    D1, K, C = 8, 3, 16
    bound = 1.0 / np.sqrt(K)
    z_re = jax.random.uniform(k1, (D1, K, K), jnp.float32, -bound, bound)
    z_im = jax.random.uniform(k2, (D1, K, K), jnp.float32, -bound, bound)
    # TODO(synk): original module loads ch_locations_2d(dataset_name); replaced
    # with deterministic synthetic channel locations in [0, 1].
    loc = jax.random.uniform(k3, (C, 2), jnp.float32, 0.0, 1.0)

    # Case 1: small T -> exercises the (C, B*T) lane-fold fallback path.
    B1, T1 = 2, 32
    X1 = jax.random.normal(k4, (B1, C, T1), jnp.float32)
    out1 = jax.block_until_ready(spatial_attention(X1, z_re, z_im, loc))
    ref1 = reference(X1, z_re, z_im, loc)
    np.testing.assert_allclose(np.asarray(out1), np.asarray(ref1),
                               rtol=1e-4, atol=1e-4)

    # Case 2: larger, non-lane-aligned T -> exercises the native (B,C,T) tiled
    # path with T padding/slicing.
    B2, T2 = 2, 4200
    X2 = jax.random.normal(k5, (B2, C, T2), jnp.float32)
    out2 = jax.block_until_ready(spatial_attention(X2, z_re, z_im, loc))
    ref2 = reference(X2, z_re, z_im, loc)
    np.testing.assert_allclose(np.asarray(out2), np.asarray(ref2),
                               rtol=1e-4, atol=1e-4)

    print("KERNEL_OK")
</pallas_src>

<mosaic_0001>
module attributes {stable_mosaic.version = 11 : i64} {
  func.func @attn_matmul_kernel(%arg0: i32, %arg1: memref<8x16xf32, #tpu.memory_space<vmem>>, %arg2: memref<16x64xf32, #tpu.memory_space<vmem>>, %arg3: memref<8x64xf32, #tpu.memory_space<vmem>>) attributes {dimension_semantics = [#tpu.dimension_semantics<parallel>], iteration_bounds = array<i64: 1>, scalar_prefetch = 0 : i64, scratch_operands = 0 : i64, tpu.core_type = #tpu.core_type<tc>, window_params = [{pipeline_mode = #tpu.pipeline_mode<synchronous>, transform_indices = @transform_0, window_bounds = array<i64: 8, 16>}, {transform_indices = @transform_1, window_bounds = array<i64: 16, 64>}, {transform_indices = @transform_2, window_bounds = array<i64: 8, 64>}]} {
    %c0 = arith.constant 0 : index
    %c0_0 = arith.constant 0 : index
    %0 = vector.load %arg1[%c0, %c0_0] : memref<8x16xf32, #tpu.memory_space<vmem>>, vector<8x16xf32>
    %c0_1 = arith.constant 0 : index
    %c0_2 = arith.constant 0 : index
    %1 = vector.load %arg2[%c0_1, %c0_2] : memref<16x64xf32, #tpu.memory_space<vmem>>, vector<16x64xf32>
    %cst = arith.constant dense<0.000000e+00> : vector<8x64xf32>
    %2 = tpu.matmul %0, %1, %cst {dimension_numbers = #tpu.dot_dimension_numbers<[1], [0], [0], [1], [0, 0, 1, 1], [], []>} : vector<8x16xf32>, vector<16x64xf32>, vector<8x64xf32> -> vector<8x64xf32>
    %c0_3 = arith.constant 0 : index
    %c0_4 = arith.constant 0 : index
    %3 = vector.load %arg3[%c0_3, %c0_4] : memref<8x64xf32, #tpu.memory_space<vmem>>, vector<8x64xf32>
    tpu.vector_store %arg3[%c0_3, %c0_4], %2 {strides = array<i32>} : memref<8x64xf32, #tpu.memory_space<vmem>>, vector<8x64xf32>,
    return
  }
  func.func @transform_0(%arg0: i32) -> (i32, i32) {
    %c0_i32 = arith.constant 0 : i32
    %c0_i32_0 = arith.constant 0 : i32
    %c0_i32_1 = arith.constant 0 : i32
    return %c0_i32, %c0_i32_0 : i32, i32
  }
  func.func @transform_1(%arg0: i32) -> (i32, i32) {
    %c0_i32 = arith.constant 0 : i32
    %c0_i32_0 = arith.constant 0 : i32
    return %c0_i32, %arg0 : i32, i32
  }
  func.func @transform_2(%arg0: i32) -> (i32, i32) {
    %c0_i32 = arith.constant 0 : i32
    %c0_i32_0 = arith.constant 0 : i32
    return %c0_i32, %arg0 : i32, i32
  }
}

</mosaic_0001>

<bundles_post_ra>
// kernel: spatial_attention.1
= control target key start
LH: loop header
LB: loop body
LE: loop exit
PB: predicated region body
PF: predicated region fallthrough
CT: control target
= control target key end

     0   :  { %v107_v0 = vmov 0.0   ;;  %vm108_vm0 = vmmov 0   ;;  %vm14_vm1 = vcmask 130048   ;;  %vm88_vm2 = vcmask 523264   ;;  %s136_s1 = inlined_call_operand.vmem [shape: f32[16,64], index: 1, kind: input, shape index: {}]   ;;  %s137_s0 = inlined_call_operand.vmem [shape: f32[8,16], index: 0, kind: input, shape index: {}]   ;;  %s138_s2 = inlined_call_operand.vmem [shape: f32[8,64], index: 2, kind: output, shape index: {}]  }
   0x1   :  { %98 = vmatprep.subr.mxu0 %v107_v0  ;;  %v13_v1 = vld [vmem:[%s136_s1 + $0x8] sm:$0xff]  ;;  %v12_v2 = vld [vmem:[%s136_s1] sm:$0xff]  ;;  %102 = vmatprep.mubr.msk.f32.mxu0 %vm108_vm0, %v107_v0 }
   0x2   :  { %99 = vmatpush3.msra.mxu0 %v13_v1  ;;  %v11_v3 = vld [vmem:[%s137_s0] sm:$0xff] }
   0x3   :  { %100 = vmatprep.subr.mxu0 %v107_v0 }
   0x4   :  { %101 = vmatpush3.msra.mxu0 %v12_v2 }
   0x5   :  { %103 = vmatmul.mubr.msk.f32.vlgmr.msra.gmra.mxu0 %vm14_vm1, %v11_v3 }
  0xc5   :  { %v84_v4 = vpop.f32.mrf.mxu0 }
  0xc6   :  { %89 = vst.msk [vmem:[%s138_s2] sm:$0xff] %vm88_vm2, %v84_v4 }
  0xc7   :  { %v104_v5 = vpop.f32.mrf.mxu0 }

</bundles_post_ra>
